<compile_context>
chip_gen: v5e
topology: v5e:2x2
jax: 0.10.0
libtpu: 0.0.40
codegen_flags: <defaults>
</compile_context>

<pallas_src>
import jax
import jax.numpy as jnp
from jax.experimental import pallas as pl
from jax.experimental.pallas import tpu as pltpu


def _round_up(x, m):
    return ((x + m - 1) // m) * m


def _cdiv(a, b):
    return -(-a // b)


def _sublane_multiple(dtype):
    isz = jnp.dtype(dtype).itemsize
    if isz >= 4:
        return 8
    if isz == 2:
        return 16
    return 32


def _vmem_budget_bytes():
    """Generation-aware VMEM budget, leaving headroom for Mosaic scratch."""
    cap = 128 * 1024 * 1024
    try:
        cap = int(pltpu.get_tpu_info().vmem_capacity_bytes)
    except Exception:
        pass
    # 3/4 of capacity, capped at 96 MiB:
    #   v7x (64 MiB VMEM)      -> 48 MiB
    #   v5e/v6e (128 MiB VMEM) -> 96 MiB
    return min(96 * 1024 * 1024, (cap * 3) // 4)


def _tile_vmem_bytes(tn, tk, dim, isz, with_acc):
    """Byte-accurate per-step working-set estimate."""
    b = 2 * tn * dim * isz                       # x tile   (double-buffered)
    b += 2 * (2 * dim * tk + tk * dim) * isz     # w13 + w2 (double-buffered)
    b += 2 * tn * dim * isz                      # out tile (double-buffered)
    if with_acc:
        b += tn * dim * 4                        # f32 accumulator scratch
    b += 3 * tn * tk * 4                         # h13 / gated f32 intermediates
    return b


def _ffn_kernel_acc(x_ref, w13_ref, w2_ref, o_ref, acc_ref):
    """Hidden dim tiled as a reduction; f32 accumulator resident over k."""
    k = pl.program_id(1)

    @pl.when(k == 0)
    def _():
        acc_ref[...] = jnp.zeros_like(acc_ref)

    tk = w2_ref.shape[0]
    x = x_ref[...]                                                     # (tn, dim)
    # Fused gate + up projection: one (tn, dim) x (dim, 2*tk) MXU pass.
    h13 = jnp.dot(x, w13_ref[...], preferred_element_type=jnp.float32)  # (tn, 2tk)
    h1 = h13[:, :tk]
    h3 = h13[:, tk:]
    # SwiGLU gating in f32 (sigmoid uses the EUP slot).
    g = (h1 * jax.nn.sigmoid(h1)) * h3                                 # (tn, tk)
    # Partial down-projection, accumulated in f32 across hidden chunks.
    acc_ref[...] += jnp.dot(g.astype(w2_ref.dtype), w2_ref[...],
                            preferred_element_type=jnp.float32)        # (tn, dim)

    @pl.when(k == pl.num_programs(1) - 1)
    def _():
        o_ref[...] = acc_ref[...].astype(o_ref.dtype)


def _ffn_kernel_resident(x_ref, w13_ref, w2_ref, o_ref):
    """Fast path: all weights resident in VMEM; no hidden reduction axis."""
    hidden = w2_ref.shape[0]
    x = x_ref[...]
    h13 = jnp.dot(x, w13_ref[...], preferred_element_type=jnp.float32)
    h1 = h13[:, :hidden]
    h3 = h13[:, hidden:]
    g = (h1 * jax.nn.sigmoid(h1)) * h3
    o_ref[...] = jnp.dot(g.astype(w2_ref.dtype), w2_ref[...],
                         preferred_element_type=jnp.float32).astype(o_ref.dtype)


def feedforward_forward(x, w1, w3, w2, *, tn=None, tk=None):
    """x: (..., dim)  w1: (dim, hidden)  w3: (dim, hidden)  w2: (hidden, dim)"""
    orig_shape = x.shape
    dim = x.shape[-1]
    hidden = w1.shape[1]
    assert w1.shape == (dim, hidden)
    assert w3.shape == (dim, hidden)
    assert w2.shape == (hidden, dim)

    x2 = x.reshape(-1, dim)
    n = x2.shape[0]
    isz = jnp.dtype(x.dtype).itemsize
    sub = _sublane_multiple(x.dtype)
    budget = _vmem_budget_bytes()

    # ---- hidden (reduction) tile: prefer keeping all weights resident ----
    if tk is None:
        if 3 * dim * hidden * isz <= budget // 3:
            tk = hidden                      # weights-resident fast path
        else:
            tk = hidden
            for cand in (512, 256, 128):
                if hidden % cand == 0:
                    tk = cand
                    break
    assert hidden % tk == 0, "hidden dim must be divisible by the hidden tile"
    n_chunks = hidden // tk
    resident = (n_chunks == 1)

    # ---- token tile ----
    if tn is None:
        # bf16 needs ~1024 rows per weight-chunk stream to be MXU-bound on v6e.
        cap = 1024 if isz <= 2 else 512
        tn = min(cap, _round_up(n, sub))
        # Keep >= 2 token tiles so both TensorCores of a v7x chip (the
        # "parallel" megacore axis) get work on short sequences.
        if n > sub and _cdiv(n, tn) < 2:
            tn = max(sub, _round_up(_cdiv(n, 2), sub))
        # Shrink the token tile until the working set fits the VMEM budget.
        while tn > sub and _tile_vmem_bytes(tn, tk, dim, isz, not resident) > budget:
            tn = max(sub, _round_up(tn // 2, sub))

    n_pad = _round_up(n, tn)
    if n_pad != n:
        # Zero padding is benign: silu(0) * 0 @ W2 = 0.
        x2 = jnp.pad(x2, ((0, n_pad - n), (0, 0)))

    # Fused gate/up weights: within hidden chunk k, columns [2k*tk, 2k*tk+tk)
    # hold the W1 chunk and [2k*tk+tk, 2(k+1)*tk) the W3 chunk, so one
    # BlockSpec / one DMA / one MXU pass feeds the SwiGLU gate.
    w13 = jnp.concatenate(
        [w1.reshape(dim, n_chunks, tk), w3.reshape(dim, n_chunks, tk)], axis=2
    ).reshape(dim, 2 * hidden)

    vmem_limit = min(
        budget,
        max(32 * 1024 * 1024,
            _tile_vmem_bytes(tn, tk, dim, isz, not resident) + 8 * 1024 * 1024))

    if resident:
        grid = (n_pad // tn,)
        grid_spec = pltpu.PrefetchScalarGridSpec(
            num_scalar_prefetch=0,
            grid=grid,
            in_specs=[
                pl.BlockSpec((tn, dim), lambda i: (i, 0)),            # x tile
                pl.BlockSpec((dim, 2 * hidden), lambda i: (0, 0)),    # w13 (resident)
                pl.BlockSpec((hidden, dim), lambda i: (0, 0)),        # w2  (resident)
            ],
            out_specs=pl.BlockSpec((tn, dim), lambda i: (i, 0)),
        )
        kernel = _ffn_kernel_resident
        dims = ("parallel",)
    else:
        grid = (n_pad // tn, n_chunks)
        grid_spec = pltpu.PrefetchScalarGridSpec(
            num_scalar_prefetch=0,
            grid=grid,
            in_specs=[
                pl.BlockSpec((tn, dim), lambda i, k: (i, 0)),     # x (resident over k)
                pl.BlockSpec((dim, 2 * tk), lambda i, k: (0, k)),  # fused w1/w3 chunk
                pl.BlockSpec((tk, dim), lambda i, k: (k, 0)),      # w2 chunk
            ],
            out_specs=pl.BlockSpec((tn, dim), lambda i, k: (i, 0)),
            scratch_shapes=[pltpu.VMEM((tn, dim), jnp.float32)],
        )
        kernel = _ffn_kernel_acc
        dims = ("parallel", "arbitrary")

    out = pl.pallas_call(
        kernel,
        out_shape=jax.ShapeDtypeStruct((n_pad, dim), x.dtype),
        grid_spec=grid_spec,
        compiler_params=pltpu.CompilerParams(
            dimension_semantics=dims,
            vmem_limit_bytes=int(vmem_limit)),
    )(x2, w13, w2)

    return out[:n].reshape(orig_shape)


def feedforward_reference(x, w1, w3, w2):
    """Pure-JAX reference matching the PyTorch module."""
    h1 = x @ w1
    h3 = x @ w3
    return (jax.nn.silu(h1) * h3) @ w2


if __name__ == "__main__":
    # Small shapes consistent with FeedForward(dim=128, hidden_dim=192,
    # multiple_of=128, ffn_dim_multiplier=None)  ->  hidden_dim = 256.
    B, S = 2, 8
    dim = 128
    hidden_dim_param = 192
    multiple_of = 128
    hidden = multiple_of * ((hidden_dim_param + multiple_of - 1) // multiple_of)  # 256

    key = jax.random.PRNGKey(0)
    kx, k1, k2, k3 = jax.random.split(key, 4)

    x = jax.random.normal(kx, (B, S, dim), dtype=jnp.float32)
    # Weights stored as (in, out) = transpose of PyTorch nn.Linear.weight.
    w1 = jax.random.normal(k1, (dim, hidden), dtype=jnp.float32) * 0.05
    w3 = jax.random.normal(k3, (dim, hidden), dtype=jnp.float32) * 0.05
    w2 = jax.random.normal(k2, (hidden, dim), dtype=jnp.float32) * 0.05

    ref = feedforward_reference(x, w1, w3, w2)

    # 1) Reduction path: 2 token tiles x 2 hidden chunks, exercising the
    #    fused-w13 matmul, the f32 accumulator and the pl.when init/finalize.
    out_acc = feedforward_forward(x, w1, w3, w2, tn=8, tk=128)
    out_acc = jax.block_until_ready(out_acc)
    assert out_acc.shape == (B, S, dim)
    assert jnp.allclose(out_acc, ref, atol=1e-4, rtol=1e-4), "acc path mismatch"

    # 2) Default auto-tiled path: weights resident in VMEM (no hidden grid
    #    axis), token axis split into >= 2 parallel tiles.
    out_fast = feedforward_forward(x, w1, w3, w2)
    out_fast = jax.block_until_ready(out_fast)
    assert out_fast.shape == (B, S, dim)
    assert jnp.allclose(out_fast, ref, atol=1e-4, rtol=1e-4), "fast path mismatch"

    print("KERNEL_OK")
</pallas_src>

<mosaic_0001>
module attributes {stable_mosaic.version = 11 : i64} {
  func.func @_ffn_kernel_acc(%arg0: i32, %arg1: i32, %arg2: memref<8x128xf32, #tpu.memory_space<vmem>>, %arg3: memref<128x256xf32, #tpu.memory_space<vmem>>, %arg4: memref<128x128xf32, #tpu.memory_space<vmem>>, %arg5: memref<8x128xf32, #tpu.memory_space<vmem>>, %arg6: memref<8x128xf32, #tpu.memory_space<vmem>>) attributes {dimension_semantics = [#tpu.dimension_semantics<parallel>, #tpu.dimension_semantics<arbitrary>], iteration_bounds = array<i64: 2, 2>, scalar_prefetch = 0 : i64, scratch_operands = 1 : i64, tpu.core_type = #tpu.core_type<tc>, window_params = [{transform_indices = @transform_0, window_bounds = array<i64: 8, 128>}, {transform_indices = @transform_1, window_bounds = array<i64: 128, 256>}, {transform_indices = @transform_2, window_bounds = array<i64: 128, 128>}, {transform_indices = @transform_3, window_bounds = array<i64: 8, 128>}]} {
    %c0_i32 = arith.constant 0 : i32
    %0 = arith.cmpi eq, %arg1, %c0_i32 : i32
    %1 = arith.extui %0 : i1 to i32
    %c0_i32_0 = arith.constant 0 : i32
    %2 = arith.cmpi ne, %1, %c0_i32_0 : i32
    scf.if %2 {
      %cst_13 = arith.constant 0.000000e+00 : f32
      %23 = vector.broadcast %cst_13 : f32 to vector<8x128xf32>
      %c0_14 = arith.constant 0 : index
      %c0_15 = arith.constant 0 : index
      %24 = vector.load %arg6[%c0_14, %c0_15] : memref<8x128xf32, #tpu.memory_space<vmem>>, vector<8x128xf32>
      tpu.vector_store %arg6[%c0_14, %c0_15], %23 {strides = array<i32>} : memref<8x128xf32, #tpu.memory_space<vmem>>, vector<8x128xf32>,
    } else {
    }
    %c0 = arith.constant 0 : index
    %c0_1 = arith.constant 0 : index
    %3 = vector.load %arg2[%c0, %c0_1] : memref<8x128xf32, #tpu.memory_space<vmem>>, vector<8x128xf32>
    %c0_2 = arith.constant 0 : index
    %c0_3 = arith.constant 0 : index
    %4 = vector.load %arg3[%c0_2, %c0_3] : memref<128x256xf32, #tpu.memory_space<vmem>>, vector<128x256xf32>
    %cst = arith.constant dense<0.000000e+00> : vector<8x256xf32>
    %5 = tpu.matmul %3, %4, %cst {dimension_numbers = #tpu.dot_dimension_numbers<[1], [0], [0], [1], [0, 0, 1, 1], [], []>} : vector<8x128xf32>, vector<128x256xf32>, vector<8x256xf32> -> vector<8x256xf32>
    %6 = vector.extract_strided_slice %5 {offsets = [0, 0], sizes = [8, 128], strides = [1, 1]} : vector<8x256xf32> to vector<8x128xf32>
    %7 = vector.extract_strided_slice %5 {offsets = [0, 128], sizes = [8, 128], strides = [1, 1]} : vector<8x256xf32> to vector<8x128xf32>
    %8 = arith.negf %6 : vector<8x128xf32>
    %9 = math.exp %8 : vector<8x128xf32>
    %cst_4 = arith.constant 1.000000e+00 : f32
    %10 = vector.broadcast %cst_4 : f32 to vector<8x128xf32>
    %11 = arith.addf %10, %9 : vector<8x128xf32>
    %12 = arith.divf %10, %11 : vector<8x128xf32>
    %13 = arith.mulf %6, %12 : vector<8x128xf32>
    %14 = arith.mulf %13, %7 : vector<8x128xf32>
    %c0_5 = arith.constant 0 : index
    %c0_6 = arith.constant 0 : index
    %15 = vector.load %arg6[%c0_5, %c0_6] : memref<8x128xf32, #tpu.memory_space<vmem>>, vector<8x128xf32>
    %c0_7 = arith.constant 0 : index
    %c0_8 = arith.constant 0 : index
    %16 = vector.load %arg4[%c0_7, %c0_8] : memref<128x128xf32, #tpu.memory_space<vmem>>, vector<128x128xf32>
    %cst_9 = arith.constant dense<0.000000e+00> : vector<8x128xf32>
    %17 = tpu.matmul %14, %16, %cst_9 {dimension_numbers = #tpu.dot_dimension_numbers<[1], [0], [0], [1], [0, 0, 1, 1], [], []>} : vector<8x128xf32>, vector<128x128xf32>, vector<8x128xf32> -> vector<8x128xf32>
    %18 = arith.addf %15, %17 : vector<8x128xf32>
    %c0_10 = arith.constant 0 : index
    %c0_11 = arith.constant 0 : index
    %19 = vector.load %arg6[%c0_10, %c0_11] : memref<8x128xf32, #tpu.memory_space<vmem>>, vector<8x128xf32>
    tpu.vector_store %arg6[%c0_10, %c0_11], %18 {strides = array<i32>} : memref<8x128xf32, #tpu.memory_space<vmem>>, vector<8x128xf32>,
    %c1_i32 = arith.constant 1 : i32
    %20 = arith.cmpi eq, %arg1, %c1_i32 : i32
    %21 = arith.extui %20 : i1 to i32
    %c0_i32_12 = arith.constant 0 : i32
    %22 = arith.cmpi ne, %21, %c0_i32_12 : i32
    scf.if %22 {
      %c0_13 = arith.constant 0 : index
      %c0_14 = arith.constant 0 : index
      %23 = vector.load %arg6[%c0_13, %c0_14] : memref<8x128xf32, #tpu.memory_space<vmem>>, vector<8x128xf32>
      %c0_15 = arith.constant 0 : index
      %c0_16 = arith.constant 0 : index
      %24 = vector.load %arg5[%c0_15, %c0_16] : memref<8x128xf32, #tpu.memory_space<vmem>>, vector<8x128xf32>
      tpu.vector_store %arg5[%c0_15, %c0_16], %23 {strides = array<i32>} : memref<8x128xf32, #tpu.memory_space<vmem>>, vector<8x128xf32>,
    } else {
    }
    return
  }
  func.func @transform_0(%arg0: i32, %arg1: i32) -> (i32, i32) {
    %c0_i32 = arith.constant 0 : i32
    %c0_i32_0 = arith.constant 0 : i32
    return %arg0, %c0_i32 : i32, i32
  }
  func.func @transform_1(%arg0: i32, %arg1: i32) -> (i32, i32) {
    %c0_i32 = arith.constant 0 : i32
    %c0_i32_0 = arith.constant 0 : i32
    return %c0_i32, %arg1 : i32, i32
  }
  func.func @transform_2(%arg0: i32, %arg1: i32) -> (i32, i32) {
    %c0_i32 = arith.constant 0 : i32
    %c0_i32_0 = arith.constant 0 : i32
    return %arg1, %c0_i32 : i32, i32
  }
  func.func @transform_3(%arg0: i32, %arg1: i32) -> (i32, i32) {
    %c0_i32 = arith.constant 0 : i32
    %c0_i32_0 = arith.constant 0 : i32
    return %arg0, %c0_i32 : i32, i32
  }
}

</mosaic_0001>

<bundles_post_ra>
// kernel: tpu_custom_call.1
= control target key start
LH: loop header
LB: loop body
LE: loop exit
PB: predicated region body
PF: predicated region fallthrough
CT: control target
= control target key end

     0   :  { %s1260_s0 = inlined_call_operand.hbm [shape: f32[16,128], index: 0, kind: input, shape index: {}]   ;;  %s1261_s1 = inlined_call_operand.hbm [shape: f32[128,512], index: 1, kind: input, shape index: {}]   ;;  %s1262_s2 = inlined_call_operand.hbm [shape: f32[256,128], index: 2, kind: input, shape index: {}]   ;;  %s1263_s3 = inlined_call_operand.hbm [shape: f32[16,128], index: 3, kind: output, shape index: {}]  }
   0x1   :  { %1274 = sst [smem:[#allocation22_spill]] %s1261_s1 }
   0x2   :  { %1275 = sst [smem:[#allocation23_spill]] %s1263_s3 }
   0x3   :  { %8 = vsyncpa [#allocation4], 0 }
   0x4   :  { %10 = vsyncpa [#allocation4 + $0x1], 0 }
   0x5   :  { %11 = vsyncpa [#allocation7], 0 }
   0x6   :  { %13 = vsyncpa [#allocation7 + $0x1], 0 }
   0x7   :  { %14 = vsyncpa [#allocation5], 0 }
   0x8   :  { %16 = vsyncpa [#allocation5 + $0x1], 0  ;;  %s959_s12 = smov 0   ;;  %s961_s13 = smov 0  }
   0x9   :  { %s963_s14 = smov 0   ;;  %s965_s15 = smov 0  }
   0xa   :  { %s967_s16 = smov 0   ;;  %s969_s17 = smov 0  }
   0xb   :  { %s971_s18 = smov 0   ;;  %s973_s19 = smov 0  }
   0xc   :  { %s975_s20 = smov 0   ;;  %s977_s21 = smov 0  }
   0xd   :  { %s979_s22 = smov 0  }
   0xe LB: > { %1276 = sst [smem:[#allocation13_spill]] %s903_s15  ;;  %p49_p0 = scmp.eq.s32.totalorder %s931_s22, 0  ;;  %s931_s22 = sphi %s979_s22, %s22_s22   ;;  %s927_s21 = sphi %s977_s21, %s1303_s21   ;;  %s923_s20 = sphi %s975_s20, %s1310_s20   ;;  %s919_s19 = sphi %s973_s19, %s1301_s19   ;;  %s915_s18 = sphi %s971_s18, %s1309_s18   ;;  %s911_s17 = sphi %s969_s17, %s1300_s17   ;;  %s907_s16 = sphi %s967_s16, %s1308_s16   ;;  %s903_s15 = sphi %s965_s15, %s1307_s15   ;;  %s899_s14 = sphi %s963_s14, %s1306_s14   ;;  %s895_s13 = sphi %s961_s13, %s1305_s13   ;;  %s891_s12 = sphi %s959_s12, %s1304_s12  }
   0xf   : > { %1277 = sst [smem:[#allocation14_spill]] %s911_s17  ;;  %s67_s23 = sadd.s32 1, %s899_s14 }
  0x10   : > { %1278 = sst [smem:[#allocation15_spill]] %s927_s21  ;;  %p74_p1 = scmp.ne.s32.totalorder %s899_s14, %s895_s13 }
  0x11   : > { %p615_p2 = scmp.lt.s32.totalorder %s931_s22, 4  ;;  %s175_s24 = sand.u32 1, %s931_s22  }
  0x12   : > { %p76_p3 = por %p74_p1, %p49_p0  ;;  %s1264_s25 = sand.u32 1, %s899_s14  }
  0x13   : > { %s591_s26 = sshll.u32 %s923_s20, 4  ;;  %s573_s27 = sshll.u32 %s1264_s25, 8 }
  0x14   : > { %s1279_s1 = sld [smem:[#allocation22_spill]]  ;;  %s179_s5 = scalar_lea.vmem [#allocation6], %s573_s27 }
  0x15   : > { %s187_s6 = sshll.u32 %s179_s5, 4  ;;  %p1031_p4 = pnand %p615_p2, %p76_p3  ;;  %s188_s6 = int_to_ptr.vmem [resolvable:$true] %s187_s6 }
  0x16   : > { %s1035_s8 = scalar_lea.sflag [#allocation7], %s175_s24  ;;  %s933_s9 = smov 512  }
  0x17   : > { %s934_s10 = smov 256   ;;  %s935_s11 = smov 16  }
  0x18   : > { %p579_p5 = scmp.ge.s32.totalorder %s931_s22, 1  ;;  %p217_p6 = scmp.lt.s32.totalorder %s931_s22, 5 }
  0x19   : > { %s568_s27 = sadd.s32 4294967294, %s931_s22   ;;  %s31_s28 = sadd.s32 1, %s923_s20 }
  0x1a   : > { %s184_s30 = scalar_lea.hbm %s1279_s1, %s591_s26  ;;  %p1042_p7 = pnand %p579_p5, %p217_p6 }
  0x1b   : > { %s185_s4 = sshll.u32 %s184_s30, 4  ;;  %s1047_s26 = sadd.s32 4294967295, %s931_s22   ;;  %s186_s4 = int_to_ptr.hbm [resolvable:$true] %s185_s4 }
  0x1c   : > { %607 = dma.hbm_to_vmem [thread:$0]  (!%p1031_p4), %s186_s4, 4096, %s188_s6, %s1035_s8, %s933_s9, %s934_s10, %s935_s11  }
  0x1d   : > { %p32_p8 = scmp.ge.s32.totalorder %s31_s28, 2  ;;  %s34_s29 = sadd.s32 1, %s927_s21 }
  0x1e   : > { %s41_s30 = sadd.s32 1, %s911_s17  ;;  %p48_p9 = scmp.ne.s32.totalorder %s911_s17, %s907_s16 }
  0x1f   : > { %s1312_s28 = smov (%p32_p8, %s31_s28), 0  ;;  %s1314_s29 = smov (!%p32_p8, %s34_s29), %s927_s21 }
  0x20   : > { %1282 = sst [smem:[#allocation16_spill]] %s1312_s28  ;;  %p1063_p10 = por %p49_p0, %p48_p9 }
  0x21   : > { %p54_p11 = scmp.ne.s32.totalorder %s907_s16, %s903_s15  ;;  %p36_p12 = scmp.ge.s32.totalorder %s1314_s29, 2 }
  0x22   : > { %p55_p13 = scmp.eq.s32.totalorder %s1047_s26, 0  ;;  %s64_s5 = ssub.s32 %s923_s20, %s1312_s28 }
  0x23   : > { %p80_p1 = scmp.ne.s32.totalorder %s895_s13, %s891_s12  ;;  %s1316_s29 = smov (%p36_p12, %s1314_s29), 0 }
  0x24   : > { %1284 = sst [smem:[#allocation17_spill]] %s1316_s29  ;;  %p1079_p3 = por %p55_p13, %p54_p11 }
  0x25   : > { %p65_p0 = scmp.eq.s32.totalorder %s64_s5, 0  ;;  %s38_s9 = ssub.s32 %s927_s21, %s1316_s29 }
  0x26   : > { %p1085_p5 = por %p80_p1, %p55_p13  ;;  %p39_p6 = scmp.eq.s32.totalorder %s38_s9, 0 }
  0x27   : > { %p130_p8 = scmp.eq.s32.totalorder %s1047_s26, 3  ;;  %p136_p13 = scmp.eq.s32.totalorder %s568_s27, 3 }
  0x28   : > { %s1093_s12 = scalar_select %p65_p0, %s899_s14, %s67_s23  }
  0x29   : > { %s1096_s11 = scalar_select %p39_p6, %s911_s17, %s41_s30  }
  0x2a   : > { %1287 = sst [smem:[#allocation18_spill]] %s1093_s12  ;;  %p1101_p12 = por %p130_p8, %p48_p9 }
  0x2b   : > { %1288 = sst [smem:[#allocation19_spill]] %s1096_s11  ;;  %s156_s5 = sand.u32 1, %s911_s17  }
  0x2c   : > { %s1289_s25 = scalar_select %p1101_p12, 1, 0 }
  0x2d   : > { %s572_s1 = sshll.u32 %s927_s21, 3  ;;  %p1110_p1 = por %p136_p13, %p54_p11 }
  0x2e   : > { %1290 = sst [smem:[#allocation20_spill]] %s1289_s25  ;;  %s571_s29 = sshll.u32 %s156_s5, 3 }
  0x2f   : > { %s1291_s9 = scalar_select %p1110_p1, 1, 0 }
  0x30   : > { %s164_s12 = scalar_lea.hbm %s1260_s0, %s572_s1  ;;  %s160_s11 = scalar_lea.vmem [#allocation3], %s571_s29 }
  0x31   : > { %1292 = sst [smem:[#allocation21_spill]] %s1291_s9  ;;  %s166_s30 = sshll.u32 %s164_s12, 4  ;;  %s167_s30 = int_to_ptr.hbm [resolvable:$true] %s166_s30 }
  0x32   : > { %s168_s3 = sshll.u32 %s160_s11, 4  ;;  %p602_p9 = pnand %p615_p2, %p1063_p10  ;;  %s169_s3 = int_to_ptr.vmem [resolvable:$true] %s168_s3 }
  0x33   : > { %s1293_s27 = sand.u32 1, %s899_s14   ;;  %s592_s17 = sshll.u32 %s923_s20, 7 }
  0x34   : > { %s576_s21 = sshll.u32 %s1293_s27, 7  ;;  %s157_s15 = scalar_lea.sflag [#allocation4], %s156_s5 }
  0x35   : > { %604 = dma.hbm_to_vmem [thread:$0]  (!%p602_p9), %s167_s30, 128, %s169_s3, %s157_s15  }
  0x36   : > { %s206_s28 = scalar_lea.hbm %s1262_s2, %s592_s17  ;;  %s201_s1 = scalar_lea.vmem [#allocation8], %s576_s21 }
  0x37   : > { %s209_s12 = sshll.u32 %s201_s1, 4  ;;  %s207_s23 = sshll.u32 %s206_s28, 4  ;;  %s210_s12 = int_to_ptr.vmem [resolvable:$true] %s209_s12  ;;  %s208_s23 = int_to_ptr.hbm [resolvable:$true] %s207_s23 }
  0x38   : > { %s936_s29 = smov 128   ;;  %s937_s11 = smov 8  }
  0x39   : > { %610 = dma.hbm_to_vmem [thread:$0]  (!%p1031_p4), %s208_s23, 2048, %s210_s12, %s1035_s8, %s936_s29, %s936_s29, %s937_s11  }
  0x3a   : > { %221 = sbr.rel (%p1042_p7) target bundleno = 431 (0x1af), region = 32  ;;  %s1133_s4 = sand.u32 (!%p1042_p7), 1, %s907_s16  }
  0x3b   : > { %s580_s3 = sshll.u32 (!%p1042_p7), %s1133_s4, 3  ;;  %s224_s15 = scalar_lea.sflag (!%p1042_p7), [#allocation4], %s1133_s4 }
  0x3c   : > { %s1137_s17 = scalar_lea.vmem (!%p1042_p7), [#allocation3], %s580_s3 }
  0x3f   : > { %878 = dma.done.wait (%p1079_p3), %s224_s15, 128  }
  0x40   : > { %880 = vsyncadd (%p1079_p3), %s224_s15, 4294967168  ;;  %s233_s21 = sand.u32 1, %s1047_s26   ;;  %s235_s25 = sand.u32 1, %s895_s13  }
  0x41   : > { %s581_s7 = sshll.u32 %s235_s25, 8  ;;  %s234_s8 = scalar_lea.sflag [#allocation7], %s233_s21 }
  0x42   : > { %s1145_s24 = scalar_lea.vmem [#allocation6], %s581_s7 }
  0x43   : > { %882 = dma.done.wait (%p1085_p5), %s234_s8, 6144  }
  0x44   : > { %884 = vsyncadd (%p1085_p5), %s234_s8, 4294961152  ;;  %s582_s5 = sshll.u32 %s235_s25, 7  ;;  %s1153_s30 = scalar_lea.vmem [#allocation9], %s580_s3 }
  0x45   : > { %s1151_s9 = scalar_lea.vmem [#allocation8], %s582_s5  ;;  %p584_p2 = scmp.ne.s32.totalorder %s915_s18, 0 }
  0x47   : > { %286 = sbr.rel (%p584_p2) target bundleno = 78 (0x4e), region = 48 }
  0x4c   : > { %v938_v0 = vmov 0.0  }
  0x4d   : > { %287 = vst [vmem:[#allocation2] sm:$0xff] %v938_v0 }
  0x4e PF: > { %v319_v1 = vld [vmem:[%s1145_s24 + $0xf0] sm:$0xff]  ;;  %v317_v2 = vld [vmem:[%s1145_s24 + $0xe0] sm:$0xff]  ;;  %v320_v5 = vld [vmem:[%s1145_s24 + $0xf8] sm:$0xff]  ;;  %p586_p4 = scmp.ne.s32.totalorder %s915_s18, 1 }
  0x4f   : > { %321 = vmatpush.msra.mxu0 %v319_v1  ;;  %v315_v3 = vld [vmem:[%s1145_s24 + $0xd0] sm:$0xff]  ;;  %v313_v4 = vld [vmem:[%s1145_s24 + $0xc0] sm:$0xff]  ;;  %341 = vmatpush.msra.mxu1 %v320_v5  ;;  %v318_v7 = vld [vmem:[%s1145_s24 + $0xe8] sm:$0xff] }
  0x50   : > { %v311_v6 = vld [vmem:[%s1145_s24 + $0xb0] sm:$0xff]  ;;  %v316_v8 = vld [vmem:[%s1145_s24 + $0xd8] sm:$0xff]  ;;  %v309_v9 = vld [vmem:[%s1145_s24 + $0xa0] sm:$0xff] }
  0x51   : > { %322 = vmatpush.msra.mxu0 %v317_v2  ;;  %342 = vmatpush.msra.mxu1 %v318_v7  ;;  %v314_v10 = vld [vmem:[%s1145_s24 + $0xc8] sm:$0xff]  ;;  %v307_v11 = vld [vmem:[%s1145_s24 + $0x90] sm:$0xff]  ;;  %v312_v12 = vld [vmem:[%s1145_s24 + $0xb8] sm:$0xff] }
  0x52   : > { %v305_v13 = vld [vmem:[%s1145_s24 + $0x80] sm:$0xff]  ;;  %v310_v14 = vld [vmem:[%s1145_s24 + $0xa8] sm:$0xff]  ;;  %v303_v15 = vld [vmem:[%s1145_s24 + $0x70] sm:$0xff] }
  0x53   : > { %323 = vmatpush.msra.mxu0 %v315_v3  ;;  %343 = vmatpush.msra.mxu1 %v316_v8  ;;  %v308_v16 = vld [vmem:[%s1145_s24 + $0x98] sm:$0xff]  ;;  %v301_v17 = vld [vmem:[%s1145_s24 + $0x60] sm:$0xff]  ;;  %v306_v18 = vld [vmem:[%s1145_s24 + $0x88] sm:$0xff] }
  0x54   : > { %v299_v19 = vld [vmem:[%s1145_s24 + $0x50] sm:$0xff]  ;;  %v304_v20 = vld [vmem:[%s1145_s24 + $0x78] sm:$0xff]  ;;  %v297_v21 = vld [vmem:[%s1145_s24 + $0x40] sm:$0xff] }
  0x55   : > { %324 = vmatpush.msra.mxu0 %v313_v4  ;;  %344 = vmatpush.msra.mxu1 %v314_v10  ;;  %v302_v22 = vld [vmem:[%s1145_s24 + $0x68] sm:$0xff]  ;;  %v295_v23 = vld [vmem:[%s1145_s24 + $0x30] sm:$0xff]  ;;  %v300_v24 = vld [vmem:[%s1145_s24 + $0x58] sm:$0xff] }
  0x56   : > { %v293_v25 = vld [vmem:[%s1145_s24 + $0x20] sm:$0xff]  ;;  %v298_v26 = vld [vmem:[%s1145_s24 + $0x48] sm:$0xff]  ;;  %v291_v27 = vld [vmem:[%s1145_s24 + $0x10] sm:$0xff] }
  0x57   : > { %325 = vmatpush.msra.mxu0 %v311_v6  ;;  %345 = vmatpush.msra.mxu1 %v312_v12  ;;  %v296_v28 = vld [vmem:[%s1145_s24 + $0x38] sm:$0xff]  ;;  %v289_v29 = vld [vmem:[%s1145_s24] sm:$0xff]  ;;  %v294_v31 = vld [vmem:[%s1145_s24 + $0x28] sm:$0xff] }
  0x58   : > { %v288_v30 = vld [vmem:[%s1137_s17] sm:$0xff]  ;;  %v290_v33 = vld [vmem:[%s1145_s24 + $0x8] sm:$0xff]  ;;  %v395_v37 = vld [vmem:[%s1151_s9 + $0x60] sm:$0xff] }
  0x59   : > { %326 = vmatpush.msra.mxu0 %v309_v9  ;;  %346 = vmatpush.msra.mxu1 %v310_v14  ;;  %v292_v32 = vld [vmem:[%s1145_s24 + $0x18] sm:$0xff]  ;;  %v397_v35 = vld [vmem:[%s1151_s9 + $0x70] sm:$0xff]  ;;  %v396_v36 = vld [vmem:[%s1151_s9 + $0x68] sm:$0xff] }
  0x5a   : > { %v398_v34 = vld [vmem:[%s1151_s9 + $0x78] sm:$0xff]  ;;  %v393_v39 = vld [vmem:[%s1151_s9 + $0x50] sm:$0xff]  ;;  %v392_v40 = vld [vmem:[%s1151_s9 + $0x48] sm:$0xff] }
  0x5b   : > { %327 = vmatpush.msra.mxu0 %v307_v11  ;;  %347 = vmatpush.msra.mxu1 %v308_v16  ;;  %v394_v38 = vld [vmem:[%s1151_s9 + $0x58] sm:$0xff]  ;;  %v391_v41 = vld [vmem:[%s1151_s9 + $0x40] sm:$0xff]  ;;  %v389_v43 = vld [vmem:[%s1151_s9 + $0x30] sm:$0xff] }
  0x5c   : > { %399 = vmatpush.msra.mxu2 %v398_v34  ;;  %v390_v42 = vld [vmem:[%s1151_s9 + $0x38] sm:$0xff]  ;;  %v388_v44 = vld [vmem:[%s1151_s9 + $0x28] sm:$0xff]  ;;  %v387_v45 = vld [vmem:[%s1151_s9 + $0x20] sm:$0xff] }
  0x5d   : > { %328 = vmatpush.msra.mxu0 %v305_v13  ;;  %348 = vmatpush.msra.mxu1 %v306_v18  ;;  %v386_v46 = vld [vmem:[%s1151_s9 + $0x18] sm:$0xff]  ;;  %v385_v47 = vld [vmem:[%s1151_s9 + $0x10] sm:$0xff]  ;;  %v384_v48 = vld [vmem:[%s1151_s9 + $0x8] sm:$0xff] }
  0x5e   : > { %400 = vmatpush.msra.mxu2 %v397_v35  ;;  %v383_v49 = vld [vmem:[%s1151_s9] sm:$0xff]  ;;  %v382_v3 = vld [vmem:[#allocation2] sm:$0xff] }
  0x5f   : > { %329 = vmatpush.msra.mxu0 %v303_v15  ;;  %349 = vmatpush.msra.mxu1 %v304_v20 }
  0x60   : > { %401 = vmatpush.msra.mxu2 %v396_v36 }
  0x61   : > { %330 = vmatpush.msra.mxu0 %v301_v17  ;;  %350 = vmatpush.msra.mxu1 %v302_v22 }
  0x62   : > { %402 = vmatpush.msra.mxu2 %v395_v37 }
  0x63   : > { %331 = vmatpush.msra.mxu0 %v299_v19  ;;  %351 = vmatpush.msra.mxu1 %v300_v24 }
  0x64   : > { %403 = vmatpush.msra.mxu2 %v394_v38 }
  0x65   : > { %332 = vmatpush.msra.mxu0 %v297_v21  ;;  %352 = vmatpush.msra.mxu1 %v298_v26 }
  0x66   : > { %404 = vmatpush.msra.mxu2 %v393_v39 }
  0x67   : > { %333 = vmatpush.msra.mxu0 %v295_v23  ;;  %353 = vmatpush.msra.mxu1 %v296_v28 }
  0x68   : > { %405 = vmatpush.msra.mxu2 %v392_v40 }
  0x69   : > { %334 = vmatpush.msra.mxu0 %v293_v25  ;;  %354 = vmatpush.msra.mxu1 %v294_v31 }
  0x6a   : > { %406 = vmatpush.msra.mxu2 %v391_v41 }
  0x6b   : > { %335 = vmatpush.msra.mxu0 %v291_v27  ;;  %355 = vmatpush.msra.mxu1 %v292_v32 }
  0x6c   : > { %407 = vmatpush.msra.mxu2 %v390_v42 }
  0x6d   : > { %336 = vmatpush.msra.mxu0 %v289_v29  ;;  %356 = vmatpush.msra.mxu1 %v290_v33 }
  0x6e   : > { %337 = vmatmul.f32.vlgmr.msra.gmra.mxu0 %v288_v30  ;;  %357 = vmatmul.f32.vlgmr.msra.gmra.mxu1 %v288_v30 }
  0x6f   : > { %408 = vmatpush.msra.mxu2 %v389_v43 }
  0x71   : > { %409 = vmatpush.msra.mxu2 %v388_v44 }
  0x73   : > { %410 = vmatpush.msra.mxu2 %v387_v45 }
  0x75   : > { %411 = vmatpush.msra.mxu2 %v386_v46 }
  0x77   : > { %412 = vmatpush.msra.mxu2 %v385_v47 }
  0x79   : > { %413 = vmatpush.msra.mxu2 %v384_v48 }
  0x7b   : > { %414 = vmatpush.msra.mxu2 %v383_v49 }
  0xeb   : > { %v338_v50 = vpop.f32.mrf.mxu0  ;;  %v358_v0 = vpop.f32.mrf.mxu1 }
  0xec   : > { %v585_v51 = vmul.f32 -1.442695, %v338_v50 }
  0xee   : > { %711 = vpow2.f32 %v585_v51 }
  0xf4   : > { %v712_v52 = vpop.eup %711 }
  0xf5   : > { %v364_v53 = vadd.f32 1.0, %v712_v52 }
  0xf7   : > { %713 = vrcp.f32 %v364_v53  ;;  %v376_v57 = vand.u32 2147483648, %v364_v53  ;;  %v374_v59 = vand.u32 2147483647, %v364_v53  ;;  %vm370_vm1 = vweird.f32 %v364_v53 }
  0xf9   : > { %v377_v61 = vor.u32 1.1754944e-38, %v376_v57  ;;  %vm375_vm3 = vcmp.eq.f32.partialorder %v374_v59, 8.507059e+37 }
  0xfd   : > { %v714_v54 = vpop.eup %713 }
  0xfe   : > { %v366_v55 = vmul.f32 %v714_v54, %v364_v53  ;;  %vm371_vm0 = vweird.f32 %v714_v54 }
  0xff   : > { %vm372_vm2 = vmor %vm370_vm1, %vm371_vm0 }
 0x100   : > { %v367_v56 = vsub.f32 1.0, %v366_v55 }
 0x102   : > { %v368_v58 = vmul.f32 %v714_v54, %v367_v56 }
 0x104   : > { %v369_v60 = vadd.f32 %v714_v54, %v368_v58 }
 0x106   : > { %v373_v62 = vsel %vm372_vm2, %v714_v54, %v369_v60 }
 0x107   : > { %v378_v63 = vsel %vm375_vm3, %v377_v61, %v373_v62 }
 0x108   : > { %v380_v1 = vmul.f32 %v378_v63, %v338_v50 }
 0x10a   : > { %v381_v2 = vmul.f32 %v380_v1, %v358_v0 }
 0x10c   : > { %415 = vmatmul.f32.vlgmr.msra.gmra.mxu2 %v381_v2 }
 0x18e   : > { %424 = sbr.rel (%p586_p4) target bundleno = 411 (0x19b), region = 52 }
 0x18f   : > { %v416_v4 = vpop.f32.mrf.mxu2 }
 0x190   : > { %v419_v5 = vadd.f32 %v416_v4, %v382_v3 }
 0x192   : > { %420 = vst [vmem:[#allocation2] sm:$0xff] %v419_v5 }
 0x199   : > { %v425_v6 = vld [vmem:[#allocation2] sm:$0xff] }
 0x19a   : > { %426 = vst [vmem:[%s1153_s30] sm:$0xff] %v425_v6 }
 0x19b PF: > { %s588_s6 = sshll.u32 %s919_s19, 3  ;;  %s1295_s28 = sld [smem:[#allocation23_spill]] }
 0x19c   : > { %s440_s12 = sshll.u32 %s1153_s30, 4  ;;  %s428_s29 = scalar_lea.sflag [#allocation5], %s1133_s4  ;;  %s441_s12 = int_to_ptr.vmem [resolvable:$true] %s440_s12 }
 0x1a1   : > { %s438_s1 = scalar_lea.hbm %s1295_s28, %s588_s6  ;;  %s825_s19 = scalar_lea.hbm %s1295_s28, 16 }
 0x1a2   : > { %s442_s23 = sshll.u32 %s438_s1, 4  ;;  %s443_s23 = int_to_ptr.hbm [resolvable:$true] %s442_s23 }
 0x1a3   : > { %s819_s18 = sshra.s32 %s443_s23, 4  ;;  %s820_s18 = int_to_ptr.hbm [resolvable:$true] %s819_s18 }
 0x1a4   : > { %s821_s11 = scalar_lea.hbm %s820_s18, 8  ;;  %p826_p3 = scmp.lt.s32.totalorder %s820_s18, %s1295_s28 }
 0x1a5   : > { %p822_p7 = scmp.ne.s32.totalorder %s820_s18, %s821_s11  ;;  %p827_p0 = scmp.lt.s32.totalorder %s825_s19, %s821_s11 }
 0x1a7   : > { %p823_p10 = pnand %p822_p7, %p1101_p12  ;;  %p828_p5 = por %p827_p0, %p826_p3 }
 0x1a9   : > { %p824_p11 = pneg %p823_p10 }
 0x1ab   : > { %p829_p6 = pnand %p828_p5, %p824_p11 }
 0x1ad   : > { %832 = shalt.err (!%p829_p6)
}
 0x1ae   : > { %599 = dma.vmem_to_hbm [thread:$0]  (%p1101_p12), %s441_s12, 128, %s443_s23, %s428_s29  }
 0x1af PF: > { %s1296_s4 = sld [smem:[#allocation13_spill]]  ;;  %p616_p8 = scmp.ge.s32.totalorder %s931_s22, 2 }
 0x1b1   : > { %p612_p13 = pnand %p616_p8, %p1110_p1 }
 0x1b3   : > { %p613_p9 = pneg %p612_p13 }
 0x1b5   : > { %s454_s7 = sand.u32 1, %s1296_s4  }
 0x1b6   : > { %s455_s8 = scalar_lea.sflag [#allocation5], %s454_s7 }
 0x1b7   : > { %886 = dma.done.wait (%p613_p9), %s455_s8, 128  }
 0x1b8   : > { %888 = vsyncadd (%p613_p9), %s455_s8, 4294967168  ;;  %s22_s22 = sadd.s32 1, %s931_s22   ;;  %s1298_s24 = sld [smem:[#allocation18_spill]] }
 0x1b9   : > { %p19_p2 = scmp.ge.s32.totalorder %s22_s22, 6   ;;  %s1299_s5 = sld [smem:[#allocation14_spill]] }
 0x1ba   : > { %s1300_s17 = sld [smem:[#allocation19_spill]]  ;;  %s1304_s12 = smov %s895_s13 }
 0x1bb   : > { %s1301_s19 = sld [smem:[#allocation15_spill]]  ;;  %s1305_s13 = smov %s899_s14 }
 0x1bc   : > { %s1302_s9 = sld [smem:[#allocation16_spill]]  ;;  %s1307_s15 = smov %s907_s16 }
 0x1bd   : > { %s1303_s21 = sld [smem:[#allocation17_spill]]  ;;  %s1309_s18 = smov %s923_s20 }
 0x1be   : > { %s1306_s14 = smov %s1298_s24  ;;  %21 = sbr.rel (!%p19_p2) target bundleno = 14 (0xe), region = 109 }
 0x1bf   : > { %s1308_s16 = smov %s1299_s5 }
 0x1c2   : > { %s1310_s20 = smov %s1302_s9 }
 0x1c3   :  { %461 = vsyncpa [#allocation4], 1 }
 0x1c4   :  { %463 = vsyncpa [#allocation4 + $0x1], 1 }
 0x1c5   :  { %464 = vsyncpa [#allocation7], 1 }
 0x1c6   :  { %466 = vsyncpa [#allocation7 + $0x1], 1 }
 0x1c7   :  { %467 = vsyncpa [#allocation5], 1 }
 0x1c8   :  { %469 = vsyncpa [#allocation5 + $0x1], 1 }

</bundles_post_ra>
